<compile_context>
chip_gen: v7x
topology: tpu7x:2x2x1
jax: 0.10.0
libtpu: 0.0.40
codegen_flags: <defaults>
</compile_context>

<pallas_src>
import functools

import numpy as np
import jax
import jax.numpy as jnp
from jax import lax
from jax.experimental import pallas as pl
from jax.experimental.pallas import tpu as pltpu


# ----------------------------- constant operators ---------------------------
_H2 = np.array([[1.0, 1.0], [1.0, -1.0]]) / np.sqrt(2.0)
_X2 = np.array([[0.0, 1.0], [1.0, 0.0]])
_YT2 = np.array([[0.0, -1.0], [1.0, 0.0]])     # RY(t) = cos(t/2) I + sin(t/2) YT


def _full_1q(gate2, q, n):
    # qubit 0 is the most-significant bit of the statevector index
    return np.kron(np.kron(np.eye(2 ** q), gate2), np.eye(2 ** (n - 1 - q)))


def _full_cnot(ctrl, tgt, n):
    D = 2 ** n
    U = np.zeros((D, D))
    for s in range(D):
        s2 = s ^ (1 << (n - 1 - tgt)) if ((s >> (n - 1 - ctrl)) & 1) else s
        U[s2, s] = 1.0
    return U


# ----------------------------- Pallas kernel --------------------------------
def qmeasure_kernel(amat_ref, zsign_ref, out_ref, *, dim):
    """w-only quantum measurement, replicated over the batch tile.

    State layout: a (TB, 128) f32 row-stacked state [Re(0..D) | Im(0..D) | 0],
    lanes padded to 128 so every matmul is lane-dense.

      psi0 = |+..+>              (encode_token folded: H layer gives uniform
                                  amplitudes; the data RX is a global phase
                                  and is dropped — see header proof)
      psi  = psi0 @ A            (entire w-dependent ansatz, pre-composed)
      out  = (psi*psi) @ Zsign   (<Z_q> for the measured qubits, lane-dense)

    All rows of the tile are identical by construction, which realises the
    batch broadcast directly in the lane-dense output store.
    """
    TB, NL = out_ref.shape
    lane = lax.broadcasted_iota(jnp.int32, (TB, NL), 1)
    psi0 = jnp.where(lane < dim, jnp.float32(dim ** -0.5), jnp.float32(0.0))

    psi = jnp.dot(psi0, amat_ref[...], preferred_element_type=jnp.float32)
    out_ref[...] = jnp.dot(psi * psi, zsign_ref[...],
                           preferred_element_type=jnp.float32)


# ----------------------------- wrapper (glue) -------------------------------
def _round_up(x, m):
    return ((x + m - 1) // m) * m


def _pick_tile_and_grid(B):
    # Aim for >=2 grid steps (v7x has two TensorCores; "parallel" semantics
    # shard grid steps across them), cap the tile at 256 rows so the output
    # tile (double-buffered) stays far below even v7x's 64 MiB VMEM.
    TB = max(8, min(256, _round_up(-(-B // 2), 8)))
    gsteps = -(-B // TB)
    return TB, gsteps


@functools.partial(jax.jit, static_argnums=(2, 3))
def qlayer_forward(data, w, nqubits, circuit):
    """QLayer.forward.  circuit in {"qk", "value"}; data:(B,n) f32, w:(P,) f32.

    Output is mathematically independent of `data` (global-phase argument in
    the header); `data` is used only for the batch size.
    """
    B, n = data.shape
    assert n == nqubits
    P = int(w.shape[0])
    D = 2 ** n
    D2 = 2 * D
    n_out = n if circuit == "value" else 1
    NL = max(128, _round_up(D2, 128))              # lane-dense operator width

    # ---- trace-time constants (numpy) ----
    Xfull = np.stack([_full_1q(_X2, q, n) for q in range(n)]).astype(np.float32)
    YTfull = np.stack([_full_1q(_YT2, q, n) for q in range(n)]).astype(np.float32)
    ring = np.eye(D)
    for q in range(n - 1):
        ring = _full_cnot(q, q + 1, n) @ ring
    ring = (_full_cnot(n - 1, 0, n) @ ring).astype(np.float32)   # fused CNOT ring

    # <Z_q> sign matrix, lane-padded to NL (Re and Im rows get the same sign).
    zsign = np.zeros((NL, NL), np.float32)
    for q in range(n_out):
        col = np.array([1.0 if ((s >> (n - 1 - q)) & 1) == 0 else -1.0
                        for s in range(D)], np.float32)
        zsign[:D, q] = col
        zsign[D:D2, q] = col

    # ---- w-dependent ansatz composed once (tiny DxD complex matmuls in XLA) -
    c = jnp.cos(w.astype(jnp.float32) * 0.5)
    s = jnp.sin(w.astype(jnp.float32) * 0.5)
    Xf, YTf, ringj = jnp.asarray(Xfull), jnp.asarray(YTfull), jnp.asarray(ring)
    eye = jnp.eye(D, dtype=jnp.float32)

    def compose(U, Gr, Gi=None):          # total <- G @ total (complex blocks)
        Ur, Ui = U
        if Gi is None:
            return Gr @ Ur, Gr @ Ui
        return Gr @ Ur - Gi @ Ui, Gr @ Ui + Gi @ Ur

    def rx(U, q, p):                      # RX = cos I - i sin X_q
        return compose(U, c[p] * eye, -s[p] * Xf[q])

    def ry(U, q, p):                      # RY = cos I + sin YT_q   (real)
        return compose(U, c[p] * eye + s[p] * YTf[q])

    U = (eye, jnp.zeros((D, D), jnp.float32))
    L = P // n
    for q in range(n):
        U = rx(U, q, q)
    for q in range(n):
        U = ry(U, q, n + q)
    if circuit == "qk":                   # qk_ansatz
        for layer in range(2, L + 1):
            U = compose(U, ringj)
            if layer != L:
                for q in range(n):
                    U = ry(U, q, n * layer + q)
            else:
                U = ry(U, 0, n * layer)
    elif circuit == "value":              # v_ansatz
        for layer in range(2, L):
            U = compose(U, ringj)
            for q in range(n):
                U = ry(U, q, n * layer + q)
    else:
        raise ValueError(circuit)
    Ur, Ui = U
    # stacked real form of the ansatz acting on row-vectors [Re | Im],
    # zero-padded to NL lanes so the in-kernel matmul is lane-dense.
    amat = jnp.concatenate(
        [jnp.concatenate([Ur.T, Ui.T], axis=1),
         jnp.concatenate([-Ui.T, Ur.T], axis=1)], axis=0)          # (2D, 2D)
    amat_pad = jnp.zeros((NL, NL), jnp.float32).at[:D2, :D2].set(amat)

    TB, gsteps = _pick_tile_and_grid(B)
    B_pad = TB * gsteps

    out = pl.pallas_call(
        functools.partial(qmeasure_kernel, dim=D),
        out_shape=jax.ShapeDtypeStruct((B_pad, NL), jnp.float32),
        grid_spec=pltpu.PrefetchScalarGridSpec(
            num_scalar_prefetch=0,
            grid=(gsteps,),
            in_specs=[
                pl.BlockSpec((NL, NL), lambda i: (0, 0)),   # ansatz (resident)
                pl.BlockSpec((NL, NL), lambda i: (0, 0)),   # Z signs (resident)
            ],
            out_specs=pl.BlockSpec((TB, NL), lambda i: (i, 0)),
        ),
        compiler_params=pltpu.CompilerParams(
            dimension_semantics=("parallel",)),
    )(amat_pad, jnp.asarray(zsign))

    out = out[:B, :n_out]
    return out[:, 0] if circuit == "qk" else out


# ----------------------------- numpy reference (mirrors torch code) ---------
# The reference simulates the FULL circuit, including the per-row data
# rotations of encode_token, in float64 — it is the verification that the
# data-free kernel keeps the module's forward semantics.
class _RefCircuit:
    def __init__(self, n):
        self.n = n
        self.psi = np.zeros(2 ** n, np.complex128)
        self.psi[0] = 1.0

    def _apply(self, U):
        self.psi = U @ self.psi

    def H(self, q):
        self._apply(_full_1q(_H2, q, self.n))

    def rx(self, q, theta):
        c, s = np.cos(theta / 2), np.sin(theta / 2)
        self._apply(_full_1q(np.array([[c, -1j * s], [-1j * s, c]]), q, self.n))

    def ry(self, q, theta):
        c, s = np.cos(theta / 2), np.sin(theta / 2)
        self._apply(_full_1q(np.array([[c, -s], [s, c]]), q, self.n))

    def cnot(self, ctrl, tgt):
        self._apply(_full_cnot(ctrl, tgt, self.n))

    def exp_z(self, q):
        sign = np.array([1.0 if ((s >> (self.n - 1 - q)) & 1) == 0 else -1.0
                         for s in range(2 ** self.n)])
        return float(np.sum(np.abs(self.psi) ** 2 * sign))


def _encode_token(c, data, n):
    for i in range(n):
        c.H(i)
        c.rx(i, theta=data[i])


def _qk_ansatz(c, data, parameters, n):
    for i in range(n):
        c.rx(i, theta=parameters[i])
    for i in range(n):
        c.ry(i, theta=parameters[n + i])
    for layer in range(2, parameters.shape[0] // n + 1):
        for i in range(n - 1):
            c.cnot(i, i + 1)
        c.cnot(n - 1, 0)
        if layer != parameters.shape[0] // n:
            for i in range(n):
                c.ry(i, theta=parameters[n * layer + i])
        else:
            c.ry(0, theta=parameters[n * layer])


def _v_ansatz(c, data, parameters, n):
    for i in range(n):
        c.rx(i, theta=parameters[i])
    for i in range(n):
        c.ry(i, theta=parameters[n + i])
    for layer in range(2, parameters.shape[0] // n):
        for i in range(n - 1):
            c.cnot(i, i + 1)
        c.cnot(n - 1, 0)
        for i in range(n):
            c.ry(i, theta=parameters[n * layer + i])


def ref_measure_query_key(data, parameters, n):
    c = _RefCircuit(n)
    _encode_token(c, data, n)
    _qk_ansatz(c, data, parameters, n)
    return c.exp_z(0)


def ref_measure_value(data, parameters, n):
    c = _RefCircuit(n)
    _encode_token(c, data, n)
    _v_ansatz(c, data, parameters, n)
    return np.array([c.exp_z(i) for i in range(n)])


# ----------------------------- main ------------------------------------------
if __name__ == "__main__":
    nqubits = 4
    B = 16
    key = jax.random.PRNGKey(0)
    k_data, k_wqk, k_wv = jax.random.split(key, 3)

    # input tokens: (batch, nqubits) rotation angles
    x = jax.random.normal(k_data, (B, nqubits), dtype=jnp.float32)

    # deterministic parameter init: torch.normal(0, 1/sqrt(par_sizes[-1]))
    P_qk = 3 * nqubits + 1                      # QLayer(measure_query_key, (13,), 4)
    w_qk = jax.random.normal(k_wqk, (P_qk,), dtype=jnp.float32) / np.sqrt(P_qk)
    P_v = 4 * nqubits                           # QLayer(measure_value, (16,), 4)
    w_v = jax.random.normal(k_wv, (P_v,), dtype=jnp.float32) / np.sqrt(P_v)

    out_qk = jax.block_until_ready(qlayer_forward(x, w_qk, nqubits, "qk"))
    out_v = jax.block_until_ready(qlayer_forward(x, w_v, nqubits, "value"))

    # reference statevector simulation (mirrors the torch/tensorcircuit code,
    # including the per-row data rotations)
    x_np = np.asarray(x, np.float64)
    wqk_np = np.asarray(w_qk, np.float64)
    wv_np = np.asarray(w_v, np.float64)
    ref_qk = np.array([ref_measure_query_key(x_np[b], wqk_np, nqubits)
                       for b in range(B)])
    ref_v = np.stack([ref_measure_value(x_np[b], wv_np, nqubits)
                      for b in range(B)])

    assert out_qk.shape == (B,) and out_v.shape == (B, nqubits)
    assert np.max(np.abs(np.asarray(out_qk) - ref_qk)) < 1e-4
    assert np.max(np.abs(np.asarray(out_v) - ref_v)) < 1e-4
    # TODO(synk): torch/tensorcircuit autodiff interface (torch_interface) is
    # not reproduced; only the forward pass is implemented.
    print("KERNEL_OK")
</pallas_src>

<mosaic_0001>
module attributes {stable_mosaic.version = 11 : i64} {
  func.func @qmeasure_kernel(%arg0: i32, %arg1: memref<128x128xf32, #tpu.memory_space<vmem>>, %arg2: memref<128x128xf32, #tpu.memory_space<vmem>>, %arg3: memref<8x128xf32, #tpu.memory_space<vmem>>) attributes {dimension_semantics = [#tpu.dimension_semantics<parallel>], iteration_bounds = array<i64: 2>, scalar_prefetch = 0 : i64, scratch_operands = 0 : i64, tpu.core_type = #tpu.core_type<tc>, window_params = [{pipeline_mode = #tpu.pipeline_mode<synchronous>, transform_indices = @transform_0, window_bounds = array<i64: 128, 128>}, {pipeline_mode = #tpu.pipeline_mode<synchronous>, transform_indices = @transform_1, window_bounds = array<i64: 128, 128>}, {transform_indices = @transform_2, window_bounds = array<i64: 8, 128>}]} {
    %0 = tpu.iota {dimensions = array<i32: 1>} : vector<8x128xi32>
    %c16_i32 = arith.constant 16 : i32
    %1 = vector.broadcast %c16_i32 : i32 to vector<8x128xi32>
    %2 = arith.cmpi slt, %0, %1 : vector<8x128xi32>
    %cst = arith.constant 2.500000e-01 : f32
    %cst_0 = arith.constant 0.000000e+00 : f32
    %3 = vector.broadcast %cst : f32 to vector<8x128xf32>
    %4 = vector.broadcast %cst_0 : f32 to vector<8x128xf32>
    %5 = arith.select %2, %3, %4 : vector<8x128xi1>, vector<8x128xf32>
    %c0 = arith.constant 0 : index
    %c0_1 = arith.constant 0 : index
    %6 = vector.load %arg1[%c0, %c0_1] : memref<128x128xf32, #tpu.memory_space<vmem>>, vector<128x128xf32>
    %cst_2 = arith.constant dense<0.000000e+00> : vector<8x128xf32>
    %7 = tpu.matmul %5, %6, %cst_2 {dimension_numbers = #tpu.dot_dimension_numbers<[1], [0], [0], [1], [0, 0, 1, 1], [], []>} : vector<8x128xf32>, vector<128x128xf32>, vector<8x128xf32> -> vector<8x128xf32>
    %8 = arith.mulf %7, %7 : vector<8x128xf32>
    %c0_3 = arith.constant 0 : index
    %c0_4 = arith.constant 0 : index
    %9 = vector.load %arg2[%c0_3, %c0_4] : memref<128x128xf32, #tpu.memory_space<vmem>>, vector<128x128xf32>
    %cst_5 = arith.constant dense<0.000000e+00> : vector<8x128xf32>
    %10 = tpu.matmul %8, %9, %cst_5 {dimension_numbers = #tpu.dot_dimension_numbers<[1], [0], [0], [1], [0, 0, 1, 1], [], []>} : vector<8x128xf32>, vector<128x128xf32>, vector<8x128xf32> -> vector<8x128xf32>
    %c0_6 = arith.constant 0 : index
    %c0_7 = arith.constant 0 : index
    %11 = vector.load %arg3[%c0_6, %c0_7] : memref<8x128xf32, #tpu.memory_space<vmem>>, vector<8x128xf32>
    tpu.vector_store %arg3[%c0_6, %c0_7], %10 {strides = array<i32>} : memref<8x128xf32, #tpu.memory_space<vmem>>, vector<8x128xf32>,
    return
  }
  func.func @transform_0(%arg0: i32) -> (i32, i32) {
    %c0_i32 = arith.constant 0 : i32
    %c0_i32_0 = arith.constant 0 : i32
    %c0_i32_1 = arith.constant 0 : i32
    return %c0_i32, %c0_i32_0 : i32, i32
  }
  func.func @transform_1(%arg0: i32) -> (i32, i32) {
    %c0_i32 = arith.constant 0 : i32
    %c0_i32_0 = arith.constant 0 : i32
    %c0_i32_1 = arith.constant 0 : i32
    return %c0_i32, %c0_i32_0 : i32, i32
  }
  func.func @transform_2(%arg0: i32) -> (i32, i32) {
    %c0_i32 = arith.constant 0 : i32
    %c0_i32_0 = arith.constant 0 : i32
    return %arg0, %c0_i32 : i32, i32
  }
}

</mosaic_0001>

<bundles_post_ra>
// kernel: qlayer_forward.1
= control target key start
LH: loop header
LB: loop body
LE: loop exit
PB: predicated region body
PF: predicated region fallthrough
CT: control target
= control target key end

     0   :  { %s540_s9 = smov 0   ;;  %s670_s0 = inlined_call_operand.vmem [shape: f32[128,128], index: 0, kind: input, shape index: {}]   ;;  %s671_s1 = inlined_call_operand.vmem [shape: f32[128,128], index: 1, kind: input, shape index: {}]   ;;  %s672_s2 = inlined_call_operand.vmem [shape: f32[16,128], index: 2, kind: output, shape index: {}]  }
   0x1 LB: > { %s341_s10 = sadd.s32 4294967295, %s519_s9   ;;  %p344_p0 = scmp.ge.s32.totalorder %s519_s9, 1  ;;  %s519_s9 = sphi %s540_s9, %s12_s9  }
   0x2   : > { %p102_p1 = scmp.lt.s32.totalorder %s519_s9, 3 }
   0x4   : > { %p103_p2 = pnand %p344_p0, %p102_p1 }
   0x5   : > { %v126_v0 = vld [vmem:[%s670_s0] sm:$0xff] (!%p103_p2)  ;;  %v127_v1 = vld [vmem:[%s670_s0 + $0x8] sm:$0xff] (!%p103_p2)  ;;  %v128_v2 = vld [vmem:[%s670_s0 + $0x10] sm:$0xff] (!%p103_p2)  ;;  %v521_v3 = vmov (!%p103_p2), 0.0|0.0   ;;  %vm522_vm0 = vmmov (!%p103_p2), 0   ;;  %v523_v6 = vmov (!%p103_p2), 0.0   ;;  %v122_v40 = vlaneseq (!%p103_p2) }
   0x6   : > { %106 = sbr.rel (%p103_p2) target bundleno = 466 (0x1d2), region = 28  ;;  %453 = vmatprep.subr.bf16.mxu0 (!%p103_p2), %v521_v3  ;;  %v454_v4 = vpack.c.bf16 (!%p103_p2), %v127_v1, %v126_v0  ;;  %v129_v5 = vld [vmem:[%s670_s0 + $0x18] sm:$0xff] (!%p103_p2)  ;;  %415 = vmatprep.mubr.msk.f32.mxu0 (!%p103_p2), %vm522_vm0, %v523_v6  ;;  %v130_v8 = vld [vmem:[%s670_s0 + $0x20] sm:$0xff] (!%p103_p2)  ;;  %v131_v9 = vld [vmem:[%s670_s0 + $0x28] sm:$0xff] (!%p103_p2)  ;;  %v524_v49 = vmov (!%p103_p2), 0.25   ;;  %p118_p3 = scmp.lt.s32.totalorder (!%p103_p2), %s341_s10, 1 }
   0x7   : > { %477 = vmatprep.subr.bf16.mxu1 (!%p103_p2), %v521_v3  ;;  %450 = vmatprep.mubr.msk.f32.mxu1 (!%p103_p2), %vm522_vm0, %v523_v6  ;;  %v457_v7 = vpack.c.bf16 (!%p103_p2), %v129_v5, %v128_v2  ;;  %v213_v10 = vld [vmem:[%s671_s1] sm:$0xff] (!%p103_p2)  ;;  %v214_v11 = vld [vmem:[%s671_s1 + $0x8] sm:$0xff] (!%p103_p2)  ;;  %v215_v13 = vld [vmem:[%s671_s1 + $0x10] sm:$0xff] (!%p103_p2)  ;;  %v460_v15 = vpack.c.bf16 (!%p103_p2), %v131_v9, %v130_v8  ;;  %v123_v47 = vand.u32 (!%p103_p2), 127, %v122_v40 }
   0x8   : > { %455 = vmatpush3.bf16.msra.mxu0 (!%p103_p2), %v454_v4  ;;  %v478_v12 = vpack.c.bf16 (!%p103_p2), %v214_v11, %v213_v10  ;;  %v216_v14 = vld [vmem:[%s671_s1 + $0x18] sm:$0xff] (!%p103_p2)  ;;  %v132_v16 = vld [vmem:[%s670_s0 + $0x30] sm:$0xff] (!%p103_p2)  ;;  %v217_v19 = vld [vmem:[%s671_s1 + $0x20] sm:$0xff] (!%p103_p2) }
   0x9   : > { %456 = vmatprep.subr.bf16.mxu0 (!%p103_p2), %v521_v3  ;;  %v133_v17 = vld [vmem:[%s670_s0 + $0x38] sm:$0xff] (!%p103_p2)  ;;  %v481_v18 = vpack.c.bf16 (!%p103_p2), %v216_v14, %v215_v13  ;;  %v218_v20 = vld [vmem:[%s671_s1 + $0x28] sm:$0xff] (!%p103_p2)  ;;  %v134_v22 = vld [vmem:[%s670_s0 + $0x40] sm:$0xff] (!%p103_p2)  ;;  %vm124_vm1 = vcmp.lt.s32.totalorder (!%p103_p2), %v123_v47, 16 }
   0xa   : > { %479 = vmatpush3.bf16.msra.mxu1 (!%p103_p2), %v478_v12  ;;  %v463_v21 = vpack.c.bf16 (!%p103_p2), %v133_v17, %v132_v16  ;;  %v135_v23 = vld [vmem:[%s670_s0 + $0x48] sm:$0xff] (!%p103_p2)  ;;  %v484_v24 = vpack.c.bf16 (!%p103_p2), %v218_v20, %v217_v19  ;;  %v219_v25 = vld [vmem:[%s671_s1 + $0x30] sm:$0xff] (!%p103_p2)  ;;  %v220_v26 = vld [vmem:[%s671_s1 + $0x38] sm:$0xff] (!%p103_p2) }
   0xb   : > { %480 = vmatprep.subr.bf16.mxu1 (!%p103_p2), %v521_v3  ;;  %v466_v27 = vpack.c.bf16 (!%p103_p2), %v135_v23, %v134_v22  ;;  %v136_v28 = vld [vmem:[%s670_s0 + $0x50] sm:$0xff] (!%p103_p2)  ;;  %v137_v29 = vld [vmem:[%s670_s0 + $0x58] sm:$0xff] (!%p103_p2)  ;;  %v487_v30 = vpack.c.bf16 (!%p103_p2), %v220_v26, %v219_v25  ;;  %v221_v31 = vld [vmem:[%s671_s1 + $0x40] sm:$0xff] (!%p103_p2) }
   0xc   : > { %458 = vmatpush3.bf16.msra.mxu0 (!%p103_p2), %v457_v7  ;;  %v222_v32 = vld [vmem:[%s671_s1 + $0x48] sm:$0xff] (!%p103_p2)  ;;  %v469_v33 = vpack.c.bf16 (!%p103_p2), %v137_v29, %v136_v28  ;;  %v138_v34 = vld [vmem:[%s670_s0 + $0x60] sm:$0xff] (!%p103_p2)  ;;  %v223_v37 = vld [vmem:[%s671_s1 + $0x50] sm:$0xff] (!%p103_p2) }
   0xd   : > { %459 = vmatprep.subr.bf16.mxu0 %v521_v3  ;;  %v139_v35 = vld [vmem:[%s670_s0 + $0x68] sm:$0xff]  ;;  %v490_v36 = vpack.c.bf16 %v222_v32, %v221_v31  ;;  %v224_v38 = vld [vmem:[%s671_s1 + $0x58] sm:$0xff]  ;;  %v140_v41 = vld [vmem:[%s670_s0 + $0x70] sm:$0xff]  ;;  %s674_s10 = smov (!%p118_p3, %s341_s10), 1 }
   0xe   : > { %482 = vmatpush3.bf16.msra.mxu1 %v481_v18  ;;  %v472_v39 = vpack.c.bf16 %v139_v35, %v138_v34  ;;  %v141_v42 = vld [vmem:[%s670_s0 + $0x78] sm:$0xff]  ;;  %v493_v43 = vpack.c.bf16 %v224_v38, %v223_v37  ;;  %v225_v44 = vld [vmem:[%s671_s1 + $0x60] sm:$0xff]  ;;  %v226_v45 = vld [vmem:[%s671_s1 + $0x68] sm:$0xff]  ;;  %s345_s23 = sshll.u32 %s674_s10, 3 }
   0xf   : > { %483 = vmatprep.subr.bf16.mxu1 %v521_v3  ;;  %v475_v46 = vpack.c.bf16 %v141_v42, %v140_v41  ;;  %v496_v48 = vpack.c.bf16 %v226_v45, %v225_v44  ;;  %v227_v50 = vld [vmem:[%s671_s1 + $0x70] sm:$0xff]  ;;  %v228_v51 = vld [vmem:[%s671_s1 + $0x78] sm:$0xff]  ;;  %s121_s26 = scalar_lea.vmem %s672_s2, %s345_s23 }
  0x10   : > { %461 = vmatpush3.bf16.msra.mxu0 %v460_v15  ;;  %v499_v52 = vpack.c.bf16 %v228_v51, %v227_v50 }
  0x11   : > { %462 = vmatprep.subr.bf16.mxu0 %v521_v3 }
  0x12   : > { %485 = vmatpush3.bf16.msra.mxu1 %v484_v24 }
  0x13   : > { %486 = vmatprep.subr.bf16.mxu1 %v521_v3 }
  0x14   : > { %464 = vmatpush3.bf16.msra.mxu0 %v463_v21 }
  0x15   : > { %465 = vmatprep.subr.bf16.mxu0 %v521_v3 }
  0x16   : > { %488 = vmatpush3.bf16.msra.mxu1 %v487_v30 }
  0x17   : > { %489 = vmatprep.subr.bf16.mxu1 %v521_v3 }
  0x18   : > { %467 = vmatpush3.bf16.msra.mxu0 %v466_v27 }
  0x19   : > { %468 = vmatprep.subr.bf16.mxu0 %v521_v3 }
  0x1a   : > { %491 = vmatpush3.bf16.msra.mxu1 %v490_v36 }
  0x1b   : > { %492 = vmatprep.subr.bf16.mxu1 %v521_v3 }
  0x1c   : > { %470 = vmatpush3.bf16.msra.mxu0 %v469_v33 }
  0x1d   : > { %471 = vmatprep.subr.bf16.mxu0 %v521_v3 }
  0x1e   : > { %494 = vmatpush3.bf16.msra.mxu1 %v493_v43 }
  0x1f   : > { %495 = vmatprep.subr.bf16.mxu1 %v521_v3 }
  0x20   : > { %473 = vmatpush3.bf16.msra.mxu0 %v472_v39 }
  0x21   : > { %474 = vmatprep.subr.bf16.mxu0 %v521_v3 }
  0x22   : > { %497 = vmatpush3.bf16.msra.mxu1 %v496_v48 }
  0x23   : > { %498 = vmatprep.subr.bf16.mxu1 %v521_v3 }
  0x24   : > { %476 = vmatpush3.bf16.msra.mxu0 %v475_v46 }
  0x26   : > { %500 = vmatpush3.bf16.msra.mxu1 %v499_v52 }
  0x27   : > { %416 = vmatmul.mubr.msk.f32.vlgmr.msra.gmra.mrb[0].mxu0 %vm124_vm1, %v524_v49 }
  0xfa   : > { %v208_v53 = vpop.f32.mrb[0].mxu0 }
  0xfb   : > { %v212_v54 = vmul.f32 %v208_v53, %v208_v53  ;;  %v417_v55 = vpop.f32.mrb[1].mxu0 }
  0xfd   : > { %451 = vmatmul.mubr.f32.vlgmr.msra.gmra.mrb[0].mxu1 %v212_v54 }
 0x1d0   : > { %v295_v56 = vpop.f32.mrb[0].mxu1 }
 0x1d1   : > { %299 = vst [vmem:[%s121_s26] sm:$0xff] %v295_v56  ;;  %v452_v57 = vpop.f32.mrb[1].mxu1 }
 0x1d2 PF: > { %s12_s9 = sadd.s32 1, %s519_s9  }
 0x1d3   : > { %p9_p4 = scmp.ge.s32.totalorder %s12_s9, 4  }
 0x1d5   :  { %11 = sbr.rel (!%p9_p4) target bundleno = 1 (0x1), region = 55 }

</bundles_post_ra>
